<compile_context>
chip_gen: v7x
topology: tpu7x:2x2x1
jax: 0.10.0
libtpu: 0.0.40
codegen_flags: <defaults>
</compile_context>

<pallas_src>
import functools
import math

import jax
import jax.numpy as jnp
from jax.experimental import pallas as pl
from jax.experimental.pallas import tpu as pltpu


def _round_up(n, m):
    return ((n + m - 1) // m) * m


# ----------------------------------------------------------------------------
# Hardware-aware knobs (resolved once, cached).
# ----------------------------------------------------------------------------
_VMEM_LIMIT = None


def _vmem_limit_bytes():
    """Generation-aware scoped-VMEM limit: ~7/8 of reported VMEM, clamped.
    v5e/v6e (128 MiB) -> 112 MiB, v7x (64 MiB per TC) -> 56 MiB."""
    global _VMEM_LIMIT
    if _VMEM_LIMIT is not None:
        return _VMEM_LIMIT
    cap = None
    try:
        cap = getattr(pltpu.get_tpu_info(), "vmem_capacity_bytes", None)
    except Exception:
        cap = None
    if not cap:
        cap = 64 * 1024 * 1024  # conservative fallback: v7x per-TensorCore VMEM
    _VMEM_LIMIT = int(min(max(cap * 7 // 8, 32 * 1024 * 1024), 112 * 1024 * 1024))
    return _VMEM_LIMIT


_BUFFERED1_OK = None


def _single_buffer_supported():
    """Feature-detect BlockSpec(pipeline_mode=pl.Buffered(1)) on this JAX/libtpu
    with a tiny probe kernel; fall back to default double-buffering if not."""
    global _BUFFERED1_OK
    if _BUFFERED1_OK is not None:
        return _BUFFERED1_OK
    try:
        def _k(w_ref, x_ref, o_ref):
            o_ref[...] = x_ref[...] + w_ref[...]

        probe = pl.pallas_call(
            _k,
            out_shape=jax.ShapeDtypeStruct((16, 128), jnp.float32),
            grid=(2,),
            in_specs=[
                pl.BlockSpec((8, 128), lambda i: (0, 0), pipeline_mode=pl.Buffered(1)),
                pl.BlockSpec((8, 128), lambda i: (i, 0)),
            ],
            out_specs=pl.BlockSpec((8, 128), lambda i: (i, 0)),
        )
        out = probe(jnp.zeros((8, 128), jnp.float32), jnp.ones((16, 128), jnp.float32))
        jax.block_until_ready(out)
        _BUFFERED1_OK = bool(jnp.allclose(out, 1.0))
    except Exception:
        _BUFFERED1_OK = False
    return _BUFFERED1_OK


# ----------------------------------------------------------------------------
# Kernel body: 3 MXU matmuls + bias adds + 2 ReLUs (eval-mode dropout = id).
# ----------------------------------------------------------------------------
def _mlp_kernel(x_ref, w1_ref, b1_ref, w2_ref, b2_ref, w3_ref, b3_ref, o_ref):
    # Hoist bias loads once.
    b1 = b1_ref[...].astype(jnp.float32)
    b2 = b2_ref[...].astype(jnp.float32)
    b3 = b3_ref[...].astype(jnp.float32)

    wdt = w1_ref.dtype  # bf16 in production mode, f32 for bit-exact mode.
    h = x_ref[...].astype(wdt)                    # cast in VMEM (no HBM copy of x)
    h = jnp.dot(h, w1_ref[...], preferred_element_type=jnp.float32) + b1
    h = jnp.maximum(h, 0.0)                       # relu1  (dropout1 = identity)
    h = jnp.dot(h.astype(wdt), w2_ref[...], preferred_element_type=jnp.float32) + b2
    h = jnp.maximum(h, 0.0)                       # relu2  (dropout2 = identity)
    y = jnp.dot(h.astype(wdt), w3_ref[...], preferred_element_type=jnp.float32) + b3
    o_ref[...] = y.astype(o_ref.dtype)            # lane-dense (C padded to 128) store


# ----------------------------------------------------------------------------
# One-time parameter preparation (pad + cast OFFLINE, not per forward call).
# ----------------------------------------------------------------------------
def prepare_params(w1, b1, w2, b2, w3, b3, *, use_bf16=True):
    """Weights already transposed to (in, out), biases (1, out).
    Pads hidden / class dims to multiples of 128 (exact: zero columns stay zero
    through bias+ReLU and contribute nothing downstream) and casts weights to
    bf16 for the MXU (f32 accumulation is preserved in the kernel).
    The contraction dim (in_feature) is intentionally left un-padded so x never
    has to be copied at call time. Returns (padded_params, class_num)."""
    F, H = w1.shape
    C = w3.shape[1]
    Hp = _round_up(H, 128)
    Cp = _round_up(C, 128)
    wdt = jnp.bfloat16 if use_bf16 else jnp.float32

    # TODO(synk): on v7x only, an fp8 weight path (fp8 weights, bf16 activations,
    # f32 accumulation) would give ~2x more MXU throughput; needs accuracy checks.
    w1_p = jnp.pad(w1, ((0, 0), (0, Hp - H))).astype(wdt)
    w2_p = jnp.pad(w2, ((0, Hp - H), (0, Hp - H))).astype(wdt)
    w3_p = jnp.pad(w3, ((0, Hp - H), (0, Cp - C))).astype(wdt)
    b1_p = jnp.pad(b1, ((0, 0), (0, Hp - H))).astype(jnp.float32)
    b2_p = jnp.pad(b2, ((0, 0), (0, Hp - H))).astype(jnp.float32)
    b3_p = jnp.pad(b3, ((0, 0), (0, Cp - C))).astype(jnp.float32)
    return (w1_p, b1_p, w2_p, b2_p, w3_p, b3_p), C


# ----------------------------------------------------------------------------
# Forward wrapper.
# ----------------------------------------------------------------------------
@functools.partial(
    jax.jit,
    static_argnames=("class_num", "block_b", "single_buffer_weights", "out_dtype"),
)
def _forward(x, w1_p, b1_p, w2_p, b2_p, w3_p, b3_p, *, class_num, block_b,
             single_buffer_weights, out_dtype):
    B, F = x.shape
    Hp = w1_p.shape[1]
    Cp = w3_p.shape[1]
    vmem_limit = _vmem_limit_bytes()

    if B <= block_b:
        # Small / fully-resident case: no grid, no software pipeline. All
        # operands live in VMEM; the kernel body executes exactly once.
        y_p = pl.pallas_call(
            _mlp_kernel,
            out_shape=jax.ShapeDtypeStruct((B, Cp), out_dtype),
            in_specs=[pl.BlockSpec(memory_space=pltpu.MemorySpace.VMEM)] * 7,
            out_specs=pl.BlockSpec(memory_space=pltpu.MemorySpace.VMEM),
            compiler_params=pltpu.CompilerParams(vmem_limit_bytes=vmem_limit),
        )(x, w1_p, b1_p, w2_p, b2_p, w3_p, b3_p)
    else:
        # Batch-tiled path: x / out streamed over the grid, weights & biases
        # VMEM-resident (constant index_map -> fetched once; single-buffered
        # when supported). Ragged last tile is handled by masked partial
        # reads/writes -- no batch padding, no extra HBM copy of x.
        # TODO(synk): no K-tiled fallback yet -- in_feature/hidden large enough
        # that the resident weights exceed VMEM would need a K-reduction grid.
        TB = block_b
        grid = (pl.cdiv(B, TB),)

        def resident(shape):
            if single_buffer_weights:
                return pl.BlockSpec(shape, lambda i: (0, 0),
                                    pipeline_mode=pl.Buffered(1))
            return pl.BlockSpec(shape, lambda i: (0, 0))

        y_p = pl.pallas_call(
            _mlp_kernel,
            out_shape=jax.ShapeDtypeStruct((B, Cp), out_dtype),
            grid=grid,
            in_specs=[
                pl.BlockSpec((TB, F), lambda i: (i, 0)),   # x: streamed per tile
                resident((F, Hp)),                         # W1
                resident((1, Hp)),                         # b1
                resident((Hp, Hp)),                        # W2
                resident((1, Hp)),                         # b2
                resident((Hp, Cp)),                        # W3
                resident((1, Cp)),                         # b3
            ],
            out_specs=pl.BlockSpec((TB, Cp), lambda i: (i, 0)),
            compiler_params=pltpu.CompilerParams(
                # batch axis is embarrassingly parallel -> shardable across
                # v7x's 2 TensorCores (keep >=2 grid steps for balance).
                dimension_semantics=("parallel",),
                vmem_limit_bytes=vmem_limit,
            ),
        )(x, w1_p, b1_p, w2_p, b2_p, w3_p, b3_p)

    return y_p[:, :class_num]


def multi_adversarial_forward(x, prepared_params, class_num, *, block_b=512,
                              single_buffer_weights=None, out_dtype=jnp.float32):
    """x: (B, in_feature). prepared_params: output of prepare_params().
    Returns (B, class_num) in out_dtype."""
    if single_buffer_weights is None:
        single_buffer_weights = _single_buffer_supported()
    return _forward(x, *prepared_params, class_num=class_num, block_b=block_b,
                    single_buffer_weights=single_buffer_weights, out_dtype=out_dtype)


# ----------------------------------------------------------------------------
# Parameter init (xavier_normal_ weights as in init_weights, zero biases) and
# a pure-JAX reference.
# ----------------------------------------------------------------------------
def init_params(key, in_feature, hidden_size, class_num):
    k1, k2, k3 = jax.random.split(key, 3)

    def xavier_normal(k, fan_in, fan_out):
        std = math.sqrt(2.0 / (fan_in + fan_out))
        return std * jax.random.normal(k, (fan_in, fan_out), dtype=jnp.float32)

    w1 = xavier_normal(k1, in_feature, hidden_size)
    b1 = jnp.zeros((1, hidden_size), jnp.float32)
    w2 = xavier_normal(k2, hidden_size, hidden_size)
    b2 = jnp.zeros((1, hidden_size), jnp.float32)
    w3 = xavier_normal(k3, hidden_size, class_num)
    b3 = jnp.zeros((1, class_num), jnp.float32)
    return w1, b1, w2, b2, w3, b3


def reference_forward(x, w1, b1, w2, b2, w3, b3, dot_dtype=jnp.float32):
    def mm(a, w):
        return jnp.dot(a.astype(dot_dtype), w.astype(dot_dtype),
                       preferred_element_type=jnp.float32)

    h = jnp.maximum(mm(x, w1) + b1, 0.0)
    h = jnp.maximum(mm(h, w2) + b2, 0.0)
    return mm(h, w3) + b3


if __name__ == "__main__":
    # Shapes consistent with the module: in_feature=32, hidden=32, class_num=4.
    B, in_feature, hidden_size, class_num = 8, 32, 32, 4

    key = jax.random.PRNGKey(0)
    kx, kp = jax.random.split(key)
    x = jax.random.normal(kx, (B, in_feature), dtype=jnp.float32)
    raw = init_params(kp, in_feature, hidden_size, class_num)

    # 1) Bit-exact f32 path (resident, no grid).
    p_f32, C = prepare_params(*raw, use_bf16=False)
    y = jax.block_until_ready(multi_adversarial_forward(x, p_f32, C))
    y_ref = reference_forward(x, *raw)
    assert y.shape == (B, class_num)
    assert jnp.allclose(y, y_ref, atol=1e-5, rtol=1e-5), "mismatch (f32 resident path)"

    # 2) Production bf16-dot path (default prepare mode), resident.
    p_bf16, C = prepare_params(*raw)  # use_bf16=True by default
    yb = jax.block_until_ready(multi_adversarial_forward(x, p_bf16, C))
    yb_ref = reference_forward(x, *raw, dot_dtype=jnp.bfloat16)
    assert yb.shape == (B, class_num)
    assert jnp.allclose(yb, yb_ref, atol=3e-2, rtol=3e-2), "mismatch (bf16 resident path)"

    # 3) Batch-tiled path, divisible grid: B=512 with 128-row tiles -> grid=(4,).
    B2 = 512
    x2 = jax.random.normal(jax.random.PRNGKey(1), (B2, in_feature), dtype=jnp.float32)
    y2 = jax.block_until_ready(multi_adversarial_forward(x2, p_bf16, C, block_b=128))
    y2_ref = reference_forward(x2, *raw, dot_dtype=jnp.bfloat16)
    assert y2.shape == (B2, class_num)
    assert jnp.allclose(y2, y2_ref, atol=3e-2, rtol=3e-2), "mismatch (tiled path)"

    # 4) Batch-tiled path, ragged last tile: B=500 with 128-row tiles (no batch
    #    padding; out-of-bounds rows are masked on write).
    B3 = 500
    x3 = x2[:B3]
    y3 = jax.block_until_ready(multi_adversarial_forward(x3, p_bf16, C, block_b=128))
    assert y3.shape == (B3, class_num)
    assert jnp.allclose(y3, y2_ref[:B3], atol=3e-2, rtol=3e-2), "mismatch (ragged tiled path)"

    # TODO(synk): GRL gradient hook (grl_hook/calc_coeff) is a backward-pass-only
    # transform and training-mode dropout masks are not implemented (eval forward).
    print("KERNEL_OK")
</pallas_src>

<mosaic_0001>
module attributes {stable_mosaic.version = 11 : i64} {
  func.func @_k(%arg0: i32, %arg1: memref<8x128xf32, #tpu.memory_space<vmem>>, %arg2: memref<8x128xf32, #tpu.memory_space<vmem>>, %arg3: memref<8x128xf32, #tpu.memory_space<vmem>>) attributes {dimension_semantics = [#tpu.dimension_semantics<arbitrary>], iteration_bounds = array<i64: 2>, scalar_prefetch = 0 : i64, scratch_operands = 0 : i64, tpu.core_type = #tpu.core_type<tc>, window_params = [{pipeline_mode = #tpu.pipeline_mode<synchronous>, transform_indices = @transform_0, window_bounds = array<i64: 8, 128>}, {transform_indices = @transform_1, window_bounds = array<i64: 8, 128>}, {transform_indices = @transform_2, window_bounds = array<i64: 8, 128>}]} {
    %c0 = arith.constant 0 : index
    %c0_0 = arith.constant 0 : index
    %0 = vector.load %arg2[%c0, %c0_0] : memref<8x128xf32, #tpu.memory_space<vmem>>, vector<8x128xf32>
    %c0_1 = arith.constant 0 : index
    %c0_2 = arith.constant 0 : index
    %1 = vector.load %arg1[%c0_1, %c0_2] : memref<8x128xf32, #tpu.memory_space<vmem>>, vector<8x128xf32>
    %2 = arith.addf %0, %1 : vector<8x128xf32>
    %c0_3 = arith.constant 0 : index
    %c0_4 = arith.constant 0 : index
    %3 = vector.load %arg3[%c0_3, %c0_4] : memref<8x128xf32, #tpu.memory_space<vmem>>, vector<8x128xf32>
    tpu.vector_store %arg3[%c0_3, %c0_4], %2 {strides = array<i32>} : memref<8x128xf32, #tpu.memory_space<vmem>>, vector<8x128xf32>,
    return
  }
  func.func @transform_0(%arg0: i32) -> (i32, i32) {
    %c0_i32 = arith.constant 0 : i32
    %c0_i32_0 = arith.constant 0 : i32
    %c0_i32_1 = arith.constant 0 : i32
    return %c0_i32, %c0_i32_0 : i32, i32
  }
  func.func @transform_1(%arg0: i32) -> (i32, i32) {
    %c0_i32 = arith.constant 0 : i32
    %c0_i32_0 = arith.constant 0 : i32
    return %arg0, %c0_i32 : i32, i32
  }
  func.func @transform_2(%arg0: i32) -> (i32, i32) {
    %c0_i32 = arith.constant 0 : i32
    %c0_i32_0 = arith.constant 0 : i32
    return %arg0, %c0_i32 : i32, i32
  }
}

module attributes {stable_mosaic.version = 11 : i64} {
  func.func @_mlp_kernel(%arg0: memref<8x32xf32, #tpu.memory_space<vmem>>, %arg1: memref<32x128xf32, #tpu.memory_space<vmem>>, %arg2: memref<1x128xf32, #tpu.memory_space<vmem>>, %arg3: memref<128x128xf32, #tpu.memory_space<vmem>>, %arg4: memref<1x128xf32, #tpu.memory_space<vmem>>, %arg5: memref<128x128xf32, #tpu.memory_space<vmem>>, %arg6: memref<1x128xf32, #tpu.memory_space<vmem>>, %arg7: memref<8x128xf32, #tpu.memory_space<vmem>>) attributes {dimension_semantics = [], scalar_prefetch = 0 : i64, scratch_operands = 0 : i64, tpu.core_type = #tpu.core_type<tc>} {
    %c0 = arith.constant 0 : index
    %c0_0 = arith.constant 0 : index
    %0 = vector.load %arg2[%c0, %c0_0] : memref<1x128xf32, #tpu.memory_space<vmem>>, vector<1x128xf32>
    %c0_1 = arith.constant 0 : index
    %c0_2 = arith.constant 0 : index
    %1 = vector.load %arg4[%c0_1, %c0_2] : memref<1x128xf32, #tpu.memory_space<vmem>>, vector<1x128xf32>
    %c0_3 = arith.constant 0 : index
    %c0_4 = arith.constant 0 : index
    %2 = vector.load %arg6[%c0_3, %c0_4] : memref<1x128xf32, #tpu.memory_space<vmem>>, vector<1x128xf32>
    %c0_5 = arith.constant 0 : index
    %c0_6 = arith.constant 0 : index
    %3 = vector.load %arg0[%c0_5, %c0_6] : memref<8x32xf32, #tpu.memory_space<vmem>>, vector<8x32xf32>
    %c0_7 = arith.constant 0 : index
    %c0_8 = arith.constant 0 : index
    %4 = vector.load %arg1[%c0_7, %c0_8] : memref<32x128xf32, #tpu.memory_space<vmem>>, vector<32x128xf32>
    %cst = arith.constant dense<0.000000e+00> : vector<8x128xf32>
    %5 = tpu.matmul %3, %4, %cst {dimension_numbers = #tpu.dot_dimension_numbers<[1], [0], [0], [1], [0, 0, 1, 1], [], []>} : vector<8x32xf32>, vector<32x128xf32>, vector<8x128xf32> -> vector<8x128xf32>
    %6 = vector.broadcast %0 : vector<1x128xf32> to vector<8x128xf32>
    %7 = arith.addf %5, %6 : vector<8x128xf32>
    %cst_9 = arith.constant 0.000000e+00 : f32
    %8 = vector.broadcast %cst_9 : f32 to vector<8x128xf32>
    %9 = arith.maximumf %7, %8 : vector<8x128xf32>
    %c0_10 = arith.constant 0 : index
    %c0_11 = arith.constant 0 : index
    %10 = vector.load %arg3[%c0_10, %c0_11] : memref<128x128xf32, #tpu.memory_space<vmem>>, vector<128x128xf32>
    %cst_12 = arith.constant dense<0.000000e+00> : vector<8x128xf32>
    %11 = tpu.matmul %9, %10, %cst_12 {dimension_numbers = #tpu.dot_dimension_numbers<[1], [0], [0], [1], [0, 0, 1, 1], [], []>} : vector<8x128xf32>, vector<128x128xf32>, vector<8x128xf32> -> vector<8x128xf32>
    %12 = vector.broadcast %1 : vector<1x128xf32> to vector<8x128xf32>
    %13 = arith.addf %11, %12 : vector<8x128xf32>
    %cst_13 = arith.constant 0.000000e+00 : f32
    %14 = vector.broadcast %cst_13 : f32 to vector<8x128xf32>
    %15 = arith.maximumf %13, %14 : vector<8x128xf32>
    %c0_14 = arith.constant 0 : index
    %c0_15 = arith.constant 0 : index
    %16 = vector.load %arg5[%c0_14, %c0_15] : memref<128x128xf32, #tpu.memory_space<vmem>>, vector<128x128xf32>
    %cst_16 = arith.constant dense<0.000000e+00> : vector<8x128xf32>
    %17 = tpu.matmul %15, %16, %cst_16 {dimension_numbers = #tpu.dot_dimension_numbers<[1], [0], [0], [1], [0, 0, 1, 1], [], []>} : vector<8x128xf32>, vector<128x128xf32>, vector<8x128xf32> -> vector<8x128xf32>
    %18 = vector.broadcast %2 : vector<1x128xf32> to vector<8x128xf32>
    %19 = arith.addf %17, %18 : vector<8x128xf32>
    %c0_17 = arith.constant 0 : index
    %c0_18 = arith.constant 0 : index
    %20 = vector.load %arg7[%c0_17, %c0_18] : memref<8x128xf32, #tpu.memory_space<vmem>>, vector<8x128xf32>
    tpu.vector_store %arg7[%c0_17, %c0_18], %19 {strides = array<i32>} : memref<8x128xf32, #tpu.memory_space<vmem>>, vector<8x128xf32>,
    return
  }
}

</mosaic_0001>

<bundles_post_ra>
// kernel: tpu_custom_call.1
= control target key start
LH: loop header
LB: loop body
LE: loop exit
PB: predicated region body
PF: predicated region fallthrough
CT: control target
= control target key end

     0   :  { %7 = vsyncpa [#allocation3], 0  ;;  %s692_s0 = inlined_call_operand.hbm [shape: f32[8,128], index: 0, kind: input, shape index: {}]   ;;  %s693_s1 = inlined_call_operand.hbm [shape: f32[16,128], index: 1, kind: input, shape index: {}]   ;;  %s694_s2 = inlined_call_operand.hbm [shape: f32[16,128], index: 2, kind: output, shape index: {}]  }
   0x1   :  { %8 = vsyncpa [#allocation6], 0 }
   0x2   :  { %10 = vsyncpa [#allocation6 + $0x1], 0 }
   0x3   :  { %11 = vsyncpa [#allocation4], 0 }
   0x4   :  { %13 = vsyncpa [#allocation4 + $0x1], 0  ;;  %s491_s9 = smov 0   ;;  %s493_s10 = smov 0  }
   0x5   :  { %s495_s11 = smov 0   ;;  %s497_s12 = smov 0  }
   0x6 LB: > { %s512_s13 = sadd.s32 4294967295, %s471_s12   ;;  %s272_s14 = sadd.s32 4294967294, %s471_s12   ;;  %s471_s12 = sphi %s497_s12, %s718_s12   ;;  %s467_s11 = sphi %s495_s11, %s717_s11   ;;  %s463_s10 = sphi %s493_s10, %s716_s10   ;;  %s459_s9 = sphi %s491_s9, %s715_s9  }
   0x7   : > { %p60_p0 = scmp.ne.s32.totalorder %s463_s10, %s459_s9  ;;  %p695_p1 = scmp.eq.s32.totalorder %s512_s13, 0 }
   0x8   : > { %p90_p3 = scmp.eq.s32.totalorder %s272_s14, 1  ;;  %p273_p5 = scmp.ge.s32.totalorder %s471_s12, 1 }
   0x9   : > { %p521_p4 = por %p695_p1, %p60_p0  ;;  %p97_p7 = scmp.lt.s32.totalorder %s471_s12, 3 }
   0xa   : > { %p526_p6 = por %p90_p3, %p60_p0  ;;  %s473_s18 = smov [#allocation2]  }
   0xb   : > { %s698_s15 = scalar_select %p521_p4, 1, 0 }
   0xc   : > { %s699_s16 = scalar_select %p526_p6, 1, 0 }
   0xd   : > { %p531_p8 = pnand %p273_p5, %p97_p7  ;;  %s110_s19 = sshll.u32 %s473_s18, 4  ;;  %s111_s19 = int_to_ptr.vmem [resolvable:$true] %s110_s19 }
   0xe   : > { %s539_s20 = sadd.s32 1, %s471_s12   ;;  %s47_s24 = sadd.s32 1, %s467_s11 }
   0xf   : > { %s700_s17 = scalar_select %p531_p8, 1, 0 }
  0x10   : > { %p294_p10 = pneg %p531_p8  ;;  %s44_s22 = ssub.s32 %s471_s12, %s539_s20 }
  0x11   : > { %p549_p12 = scmp.eq.s32.totalorder %s44_s22, 0  ;;  %s343_s27 = scalar_lea.hbm %s692_s0, 128 }
  0x12   : > { %p543_p11 = pnand %p294_p10, %p695_p1  ;;  %p344_p0 = scmp.ne.s32.totalorder %s692_s0, %s343_s27 }
  0x13   : > { %s702_s23 = scalar_select %p549_p12, 1, 0 }
  0x14   : > { %p345_p3 = pneg %p543_p11  ;;  %p350_p10 = scmp.lt.u32.totalorder %s343_s27, %s692_s0 }
  0x16   : > { %p346_p5 = pnand %p345_p3, %p344_p0 }
  0x18   : > { %p347_p7 = pneg %p346_p5 }
  0x1a   : > { %p352_p9 = pnand %p350_p10, %p347_p7 }
  0x1c   : > { %355 = shalt.err (!%p352_p9)
}
  0x1d   : > { %s356_s4 = scalar_lea.vmem %s111_s19, 128  ;;  %p364_p6 = scmp.lt.s32.totalorder %s111_s19, %s111_s19 }
  0x1e   : > { %p357_p1 = scmp.ne.s32.totalorder %s111_s19, %s356_s4  ;;  %p365_p4 = scmp.lt.s32.totalorder %s356_s4, %s356_s4 }
  0x20   : > { %p359_p2 = pnand %p357_p1, %p345_p3  ;;  %p366_p8 = por %p365_p4, %p364_p6 }
  0x22   : > { %p360_p13 = pneg %p359_p2 }
  0x24   : > { %p367_p12 = pnand %p366_p8, %p360_p13 }
  0x26   : > { %370 = shalt.err (!%p367_p12)
}
  0x27   : > { %297 = dma.hbm_to_vmem [thread:$0]  (!%p543_p11), %s692_s0, 128, %s111_s19, [#allocation3]  }
  0x28   : > { %p703_p1 = scmp.ne.s32.totalorder %s702_s23, 0  ;;  %p55_p2 = scmp.eq.s32.totalorder %s471_s12, 0 }
  0x29   : > { %p704_p4 = scmp.ne.s32.totalorder %s467_s11, %s463_s10  ;;  %p705_p6 = scmp.eq.s32.totalorder %s512_s13, 1 }
  0x2a   : > { %s575_s7 = scalar_select %p703_p1, %s467_s11, %s47_s24  }
  0x2b   : > { %p583_p8 = por %p705_p6, %p704_p4  ;;  %p307_p9 = scmp.lt.s32.totalorder %s471_s12, 2 }
  0x2c   : > { %s121_s14 = sand.u32 1, %s467_s11   ;;  %p707_p12 = pmov %p704_p4 }
  0x2d   : > { %s276_s18 = sshll.u32 %s121_s14, 3  ;;  %s277_s21 = sshll.u32 %s471_s12, 7 }
  0x2e   : > { %p56_p13 = por %p55_p2, %p707_p12  ;;  %s596_s19 = scalar_lea.hbm %s693_s1, %s277_s21 }
  0x2f   : > { %s125_s23 = scalar_lea.vmem [#allocation5], %s276_s18  ;;  %s122_s27 = scalar_lea.sflag [#allocation6], %s121_s14 }
  0x30   : > { %s132_s24 = sshll.u32 %s125_s23, 4  ;;  %p598_p11 = pnand %p307_p9, %p56_p13  ;;  %s602_s24 = int_to_ptr.vmem [resolvable:$true] %s132_s24 }
  0x31   : > { %s371_s28 = scalar_lea.hbm %s596_s19, 128  ;;  %s376_s3 = scalar_lea.hbm %s693_s1, 256 }
  0x32   : > { %p372_p0 = scmp.ne.s32.totalorder %s596_s19, %s371_s28  ;;  %p373_p3 = pneg %p598_p11 }
  0x33   : > { %p377_p10 = scmp.lt.u32.totalorder %s596_s19, %s693_s1  ;;  %p378_p1 = scmp.lt.u32.totalorder %s376_s3, %s371_s28 }
  0x34   : > { %p374_p5 = pnand %p373_p3, %p372_p0  ;;  %p380_p4 = scmp.lt.u32.totalorder %s371_s28, %s596_s19 }
  0x35   : > { %p379_p2 = por %p378_p1, %p377_p10 }
  0x36   : > { %p375_p7 = pneg %p374_p5 }
  0x37   : > { %p381_p6 = por %p380_p4, %p379_p2 }
  0x39   : > { %p382_p9 = pnand %p381_p6, %p375_p7 }
  0x3b   : > { %385 = shalt.err (!%p382_p9)
}
  0x3c   : > { %s386_s6 = scalar_lea.vmem %s602_s24, 128  ;;  %s474_s14 = smov [#allocation5]  }
  0x3d   : > { %p387_p12 = scmp.ne.s32.totalorder %s602_s24, %s386_s6  ;;  %s391_s18 = sshll.u32 %s474_s14, 4  ;;  %s392_s18 = int_to_ptr.vmem [resolvable:$false] %s391_s18 }
  0x3e   : > { %s393_s21 = scalar_lea.vmem %s392_s18, 256  ;;  %p394_p5 = scmp.lt.s32.totalorder %s602_s24, %s392_s18 }
  0x3f   : > { %p389_p13 = pnand %p387_p12, %p373_p3  ;;  %p395_p10 = scmp.lt.s32.totalorder %s393_s21, %s386_s6 }
  0x41   : > { %p390_p0 = pneg %p389_p13  ;;  %p396_p1 = por %p395_p10, %p394_p5 }
  0x43   : > { %p397_p2 = pnand %p396_p1, %p390_p0 }
  0x45   : > { %400 = shalt.err (!%p397_p2)
}
  0x46   : > { %301 = dma.hbm_to_vmem [thread:$0]  (!%p598_p11), %s596_s19, 128, %s602_s24, %s122_s27  }
  0x47   : > { %p709_p7 = scmp.ne.s32.totalorder %s700_s17, 0 }
  0x48   : > { %p710_p3 = scmp.eq.s32.totalorder (!%p709_p7), %s512_s13, 0 }
  0x49   : > { %141 = sbr.rel (%p709_p7) target bundleno = 110 (0x6e), region = 28 }
  0x50   : > { %446 = dma.done.wait (%p710_p3), [#allocation3], 128   ;;  %p711_p4 = pmov %p710_p3 }
  0x51   : > { %s636_s22 = sand.u32 1, %s463_s10   ;;  %p712_p6 = scmp.ne.s32.totalorder %s698_s15, 0 }
  0x52   : > { %448 = vsyncadd (%p711_p4), [#allocation3], 4294967168  ;;  %s280_s25 = sshll.u32 %s636_s22, 3  ;;  %s148_s23 = scalar_lea.sflag [#allocation6], %s636_s22 }
  0x53   : > { %s151_s26 = scalar_lea.vmem [#allocation5], %s280_s25 }
  0x54   : > { %450 = dma.done.wait (%p712_p6), %s148_s23, 128  }
  0x55   : > { %452 = vsyncadd (%p712_p6), %s148_s23, 4294967168  ;;  %s171_s17 = scalar_lea.vmem [#allocation7], %s280_s25  ;;  %s283_s24 = sshll.u32 %s512_s13, 7  ;;  %v172_v0 = vld [vmem:[%s151_s26] sm:$0xff]  ;;  %v173_v1 = vld [vmem:[#allocation2] sm:$0xff] }
  0x56   : > { %s190_s19 = sshll.u32 %s171_s17, 4  ;;  %v174_v2 = vadd.f32 %v173_v1, %v172_v0  ;;  %s650_s29 = scalar_lea.hbm %s694_s2, %s283_s24  ;;  %s645_s19 = int_to_ptr.vmem [resolvable:$true] %s190_s19 }
  0x57   : > { %s177_s15 = scalar_lea.sflag [#allocation4], %s636_s22  ;;  %s401_s30 = scalar_lea.vmem %s645_s19, 128 }
  0x58   : > { %175 = vst [vmem:[%s171_s17] sm:$0xff] %v174_v2  ;;  %p402_p11 = scmp.ne.s32.totalorder %s645_s19, %s401_s30  ;;  %s475_s13 = smov [#allocation7]  }
  0x59   : > { %s405_s3 = sshll.u32 %s475_s13, 4  ;;  %s406_s3 = int_to_ptr.vmem [resolvable:$false] %s405_s3 }
  0x5a   : > { %p403_p9 = pnand %p402_p11, %p583_p8  ;;  %s407_s4 = scalar_lea.vmem %s406_s3, 256 }
  0x5b   : > { %p408_p13 = scmp.lt.s32.totalorder %s645_s19, %s406_s3  ;;  %p409_p0 = scmp.lt.s32.totalorder %s407_s4, %s401_s30 }
  0x5c   : > { %p404_p12 = pneg %p403_p9 }
  0x5d   : > { %p410_p5 = por %p409_p0, %p408_p13 }
  0x5f   : > { %p411_p10 = pnand %p410_p5, %p404_p12 }
  0x61   : > { %414 = shalt.err (!%p411_p10)
}
  0x62   : > { %s415_s5 = scalar_lea.hbm %s650_s29, 128  ;;  %s419_s18 = scalar_lea.hbm %s694_s2, 256 }
  0x63   : > { %p416_p1 = scmp.ne.s32.totalorder %s650_s29, %s415_s5  ;;  %p420_p3 = scmp.lt.u32.totalorder %s650_s29, %s694_s2 }
  0x64   : > { %p421_p4 = scmp.lt.u32.totalorder %s419_s18, %s415_s5  ;;  %p423_p11 = scmp.lt.u32.totalorder %s415_s5, %s650_s29 }
  0x65   : > { %p417_p2 = pnand %p416_p1, %p583_p8 }
  0x66   : > { %p422_p6 = por %p421_p4, %p420_p3 }
  0x67   : > { %p418_p7 = pneg %p417_p2 }
  0x68   : > { %p424_p9 = por %p423_p11, %p422_p6 }
  0x6a   : > { %p425_p12 = pnand %p424_p9, %p418_p7 }
  0x6c   : > { %428 = shalt.err (!%p425_p12)
}
  0x6d   : > { %292 = dma.vmem_to_hbm [thread:$0]  (%p583_p8), %s645_s19, 128, %s650_s29, %s177_s15  }
  0x6e PF: > { %s202_s25 = sand.u32 1, %s459_s9   ;;  %p713_p13 = scmp.ne.s32.totalorder %s699_s16, 0 }
  0x6f   : > { %p714_p0 = scmp.ge.s32.totalorder %s471_s12, 2  ;;  %s203_s23 = scalar_lea.sflag [#allocation4], %s202_s25 }
  0x71   : > { %p303_p5 = pnand %p714_p0, %p713_p13 }
  0x73   : > { %454 = dma.done.wait (!%p303_p5), %s203_s23, 128  }
  0x74   : > { %456 = vsyncadd (!%p303_p5), %s203_s23, 4294967168  ;;  %p16_p10 = scmp.ge.s32.totalorder %s539_s20, 4   ;;  %s715_s9 = smov %s463_s10 }
  0x75   : > { %s716_s10 = smov %s467_s11  ;;  %s717_s11 = smov %s575_s7 }
  0x76   : > { %s718_s12 = smov %s539_s20  ;;  %18 = sbr.rel (!%p16_p10) target bundleno = 6 (0x6), region = 78 }
  0x7d   :  { %208 = vsyncpa [#allocation3], 1 }
  0x7e   :  { %210 = vsyncpa [#allocation3 + $0x1], 1 }
  0x7f   :  { %211 = vsyncpa [#allocation6], 1 }
  0x80   :  { %213 = vsyncpa [#allocation6 + $0x1], 1 }
  0x81   :  { %214 = vsyncpa [#allocation4], 1 }
  0x82   :  { %216 = vsyncpa [#allocation4 + $0x1], 1 }

// kernel: _forward.1
= control target key start
LH: loop header
LB: loop body
LE: loop exit
PB: predicated region body
PF: predicated region fallthrough
CT: control target
= control target key end

     0   :  { %12 = vsyncpa [#allocation3], 0  ;;  %s781_s0 = inlined_call_operand.hbm [shape: f32[8,32], index: 0, kind: input, shape index: {}]   ;;  %s782_s1 = inlined_call_operand.hbm [shape: f32[32,128], index: 1, kind: input, shape index: {}]   ;;  %s783_s2 = inlined_call_operand.vmem [shape: f32[1,128], index: 2, kind: input, shape index: {}]   ;;  %s784_s3 = inlined_call_operand.hbm [shape: f32[128,128], index: 3, kind: input, shape index: {}]   ;;  %s785_s4 = inlined_call_operand.vmem [shape: f32[1,128], index: 4, kind: input, shape index: {}]   ;;  %s786_s5 = inlined_call_operand.hbm [shape: f32[128,128], index: 5, kind: input, shape index: {}]   ;;  %s787_s6 = inlined_call_operand.vmem [shape: f32[1,128], index: 6, kind: input, shape index: {}]   ;;  %s788_s7 = inlined_call_operand.vmem [shape: f32[8,128], index: 7, kind: output, shape index: {}]  }
   0x1   :  { %13 = vsyncpa [#allocation5], 0 }
   0x2   :  { %14 = vsyncpa [#allocation8], 0  ;;  %s642_s24 = smov [#allocation4]   ;;  %s548_s28 = scalar_lea.hbm %s782_s1, 512 }
   0x3   :  { %s30_s25 = sshll.u32 %s642_s24, 4  ;;  %p549_p0 = scmp.ne.s32.totalorder %s782_s1, %s548_s28  ;;  %s31_s25 = int_to_ptr.vmem [resolvable:$true] %s30_s25 }
   0x4   :  { %p552_p1 = scmp.lt.u32.totalorder %s548_s28, %s782_s1 }
   0x6   :  { %p554_p2 = pnand %p552_p1, %p549_p0 }
   0x8   :  { %557 = shalt.err (!%p554_p2)
}
   0x9   :  { %s558_s10 = scalar_lea.vmem %s31_s25, 512  ;;  %p563_p4 = scmp.lt.s32.totalorder %s31_s25, %s31_s25 }
   0xa   :  { %p559_p3 = scmp.ne.s32.totalorder %s31_s25, %s558_s10  ;;  %p564_p5 = scmp.lt.s32.totalorder %s558_s10, %s558_s10 }
   0xc   :  { %p565_p6 = por %p564_p5, %p563_p4 }
   0xe   :  { %p566_p7 = pnand %p565_p6, %p559_p3 }
  0x10   :  { %569 = shalt.err (!%p566_p7)
}
  0x11   :  { %s643_s11 = smov 128   ;;  %s644_s12 = smov 8  }
  0x12   :  { %36 = dma.hbm_to_vmem [thread:$0]  %s782_s1, 512, %s31_s25, [#allocation5], %s643_s11, %s643_s11, %s644_s12  }
  0x13   :  { %s645_s15 = smov [#allocation2]   ;;  %s646_s17 = smov [#allocation6]  }
  0x14   :  { %s21_s16 = sshll.u32 %s645_s15, 4  ;;  %s44_s18 = sshll.u32 %s646_s17, 4  ;;  %s22_s16 = int_to_ptr.vmem [resolvable:$true] %s21_s16  ;;  %s45_s18 = int_to_ptr.vmem [resolvable:$true] %s44_s18 }
  0x15   :  { %s570_s21 = scalar_lea.hbm %s781_s0, 128 }
  0x16   :  { %p571_p8 = scmp.ne.s32.totalorder %s781_s0, %s570_s21  ;;  %p574_p9 = scmp.lt.u32.totalorder %s570_s21, %s781_s0 }
  0x18   :  { %p576_p10 = pnand %p574_p9, %p571_p8 }
  0x1a   :  { %579 = shalt.err (!%p576_p10)
}
  0x1b   :  { %s580_s1 = scalar_lea.vmem %s22_s16, 128  ;;  %p585_p12 = scmp.lt.s32.totalorder %s22_s16, %s22_s16 }
  0x1c   :  { %p581_p11 = scmp.ne.s32.totalorder %s22_s16, %s580_s1  ;;  %p586_p13 = scmp.lt.s32.totalorder %s580_s1, %s580_s1 }
  0x1e   :  { %p587_p0 = por %p586_p13, %p585_p12 }
  0x20   :  { %p588_p1 = pnand %p587_p0, %p581_p11 }
  0x22   :  { %591 = shalt.err (!%p588_p1)
}
  0x23   :  { %24 = dma.hbm_to_vmem [thread:$0]  %s781_s0, 128, %s22_s16, [#allocation3]  }
  0x24   :  { %s592_s30 = scalar_lea.hbm %s784_s3, 2048 }
  0x25   :  { %p593_p2 = scmp.ne.s32.totalorder %s784_s3, %s592_s30  ;;  %p596_p3 = scmp.lt.u32.totalorder %s592_s30, %s784_s3 }
  0x27   :  { %p598_p4 = pnand %p596_p3, %p593_p2 }
  0x29   :  { %601 = shalt.err (!%p598_p4)
}
  0x2a   :  { %s602_s14 = scalar_lea.vmem %s45_s18, 2048  ;;  %p607_p6 = scmp.lt.s32.totalorder %s45_s18, %s45_s18 }
  0x2b   :  { %p603_p5 = scmp.ne.s32.totalorder %s45_s18, %s602_s14  ;;  %p608_p7 = scmp.lt.s32.totalorder %s602_s14, %s602_s14 }
  0x2d   :  { %p609_p8 = por %p608_p7, %p607_p6 }
  0x2f   :  { %p610_p9 = pnand %p609_p8, %p603_p5 }
  0x31   :  { %613 = shalt.err (!%p610_p9)
}
  0x32   :  { %50 = dma.hbm_to_vmem [thread:$0]  %s784_s3, 2048, %s45_s18, [#allocation5], %s643_s11, %s643_s11, %s644_s12  }
  0x33   :  { %s647_s16 = smov [#allocation7]   ;;  %s614_s21 = scalar_lea.hbm %s786_s5, 2048 }
  0x34   :  { %s58_s17 = sshll.u32 %s647_s16, 4  ;;  %p615_p10 = scmp.ne.s32.totalorder %s786_s5, %s614_s21  ;;  %s59_s17 = int_to_ptr.vmem [resolvable:$true] %s58_s17 }
  0x35   :  { %p618_p11 = scmp.lt.u32.totalorder %s614_s21, %s786_s5 }
  0x37   :  { %p620_p12 = pnand %p618_p11, %p615_p10 }
  0x39   :  { %623 = shalt.err (!%p620_p12)
}
  0x3a   :  { %s624_s1 = scalar_lea.vmem %s59_s17, 2048  ;;  %p629_p0 = scmp.lt.s32.totalorder %s59_s17, %s59_s17 }
  0x3b   :  { %p625_p13 = scmp.ne.s32.totalorder %s59_s17, %s624_s1  ;;  %p630_p1 = scmp.lt.s32.totalorder %s624_s1, %s624_s1 }
  0x3d   :  { %p631_p2 = por %p630_p1, %p629_p0 }
  0x3f   :  { %p632_p3 = pnand %p631_p2, %p625_p13 }
  0x41   :  { %635 = shalt.err (!%p632_p3)
}
  0x42   :  { %64 = dma.hbm_to_vmem [thread:$0]  %s786_s5, 2048, %s59_s17, [#allocation8], %s643_s11, %s643_s11, %s644_s12  }
  0x43   :  { %636 = dma.done.wait [#allocation3], 128  }
  0x44   :  { %637 = vsyncadd [#allocation3], 4294967168 }
  0x45   :  { %638 = dma.done.wait [#allocation5], 2560  }
  0x46   :  { %639 = vsyncadd [#allocation5], 4294964736 }
  0x47   :  { %640 = dma.done.wait [#allocation8], 2048  }
  0x48   :  { %641 = vsyncadd [#allocation8], 4294965248  ;;  %v648_v0 = vmov 0.0|0.0   ;;  %vm649_vm0 = vmmov 0   ;;  %v650_v1 = vmov 0.0   ;;  %v83_v2 = vld [vmem:[#allocation4] sm:$0xff] }
  0x49   :  { %485 = vmatprep.subr.bf16.mxu0 %v648_v0  ;;  %412 = vmatprep.mubr.msk.f32.mxu0 %vm649_vm0, %v650_v1  ;;  %v84_v3 = vld [vmem:[#allocation4 + $0x8] sm:$0xff]  ;;  %v85_v4 = vld [vmem:[#allocation4 + $0x10] sm:$0xff]  ;;  %v86_v6 = vld [vmem:[#allocation4 + $0x18] sm:$0xff]  ;;  %vm93_vm1 = vcmask 261120  }
  0x4a   :  { %491 = vmatprep.subr.bf16.mxu1 %v648_v0  ;;  %447 = vmatprep.mubr.msk.f32.mxu1 %vm649_vm0, %v650_v1  ;;  %v486_v5 = vpack.c.bf16 %v84_v3, %v83_v2  ;;  %v168_v7 = vld [vmem:[#allocation6] sm:$0xff]  ;;  %v169_v8 = vld [vmem:[#allocation6 + $0x8] sm:$0xff]  ;;  %v170_v9 = vld [vmem:[#allocation6 + $0x10] sm:$0xff]  ;;  %v489_v11 = vpack.c.bf16 %v86_v6, %v85_v4 }
  0x4b   :  { %v171_v10 = vld [vmem:[#allocation6 + $0x18] sm:$0xff]  ;;  %v492_v12 = vpack.c.bf16 %v169_v8, %v168_v7  ;;  %v172_v14 = vld [vmem:[#allocation6 + $0x20] sm:$0xff]  ;;  %v173_v15 = vld [vmem:[#allocation6 + $0x28] sm:$0xff] }
  0x4c   :  { %487 = vmatpush3.bf16.msra.mxu0 %v486_v5  ;;  %v495_v13 = vpack.c.bf16 %v171_v10, %v170_v9  ;;  %v82_v16 = vld [vmem:[#allocation2] sm:$0xff]  ;;  %v498_v17 = vpack.c.bf16 %v173_v15, %v172_v14  ;;  %v174_v18 = vld [vmem:[#allocation6 + $0x30] sm:$0xff]  ;;  %v176_v21 = vld [vmem:[#allocation6 + $0x40] sm:$0xff] }
  0x4d   :  { %488 = vmatprep.subr.bf16.mxu0 %v648_v0  ;;  %493 = vmatpush3.bf16.msra.mxu1 %v492_v12  ;;  %v175_v19 = vld [vmem:[#allocation6 + $0x38] sm:$0xff]  ;;  %v177_v22 = vld [vmem:[#allocation6 + $0x48] sm:$0xff]  ;;  %v178_v24 = vld [vmem:[#allocation6 + $0x50] sm:$0xff] }
  0x4e   :  { %494 = vmatprep.subr.bf16.mxu1 %v648_v0  ;;  %v501_v20 = vpack.c.bf16 %v175_v19, %v174_v18  ;;  %v504_v23 = vpack.c.bf16 %v177_v22, %v176_v21  ;;  %v179_v25 = vld [vmem:[#allocation6 + $0x58] sm:$0xff]  ;;  %v180_v27 = vld [vmem:[#allocation6 + $0x60] sm:$0xff]  ;;  %v181_v28 = vld [vmem:[#allocation6 + $0x68] sm:$0xff] }
  0x4f   :  { %v507_v26 = vpack.c.bf16 %v179_v25, %v178_v24  ;;  %v510_v29 = vpack.c.bf16 %v181_v28, %v180_v27  ;;  %v182_v30 = vld [vmem:[#allocation6 + $0x70] sm:$0xff]  ;;  %v183_v31 = vld [vmem:[#allocation6 + $0x78] sm:$0xff]  ;;  %v261_v33 = vld [vmem:[#allocation7] sm:$0xff] }
  0x50   :  { %490 = vmatpush3.bf16.msra.mxu0 %v489_v11  ;;  %v513_v32 = vpack.c.bf16 %v183_v31, %v182_v30  ;;  %v262_v34 = vld [vmem:[#allocation7 + $0x8] sm:$0xff]  ;;  %v263_v35 = vld [vmem:[#allocation7 + $0x10] sm:$0xff]  ;;  %v264_v37 = vld [vmem:[#allocation7 + $0x18] sm:$0xff] }
  0x51   :  { %515 = vmatprep.subr.bf16.mxu0 %v648_v0  ;;  %496 = vmatpush3.bf16.msra.mxu1 %v495_v13  ;;  %v516_v36 = vpack.c.bf16 %v262_v34, %v261_v33  ;;  %v519_v38 = vpack.c.bf16 %v264_v37, %v263_v35  ;;  %v265_v39 = vld [vmem:[#allocation7 + $0x20] sm:$0xff]  ;;  %v266_v40 = vld [vmem:[#allocation7 + $0x28] sm:$0xff]  ;;  %v267_v42 = vld [vmem:[#allocation7 + $0x30] sm:$0xff] }
  0x52   :  { %497 = vmatprep.subr.bf16.mxu1 %v648_v0  ;;  %v522_v41 = vpack.c.bf16 %v266_v40, %v265_v39  ;;  %v268_v43 = vld [vmem:[#allocation7 + $0x38] sm:$0xff]  ;;  %v269_v45 = vld [vmem:[#allocation7 + $0x40] sm:$0xff]  ;;  %v270_v46 = vld [vmem:[#allocation7 + $0x48] sm:$0xff] }
  0x53   :  { %413 = vmatmul.mubr.msk.f32.vlgmr.msra.gmra.mrb[0].mxu0 %vm93_vm1, %v82_v16  ;;  %v525_v44 = vpack.c.bf16 %v268_v43, %v267_v42  ;;  %v528_v47 = vpack.c.bf16 %v270_v46, %v269_v45  ;;  %v271_v48 = vld [vmem:[#allocation7 + $0x50] sm:$0xff]  ;;  %v272_v49 = vld [vmem:[#allocation7 + $0x58] sm:$0xff]  ;;  %v273_v51 = vld [vmem:[#allocation7 + $0x60] sm:$0xff] }
  0x54   :  { %482 = vmatprep.mubr.msk.f32.mxu0 %vm649_vm0, %v650_v1  ;;  %517 = vmatpush3.bf16.msra.mxu0 %v516_v36  ;;  %v531_v50 = vpack.c.bf16 %v272_v49, %v271_v48  ;;  %v274_v52 = vld [vmem:[#allocation7 + $0x68] sm:$0xff]  ;;  %v361_v54 = vld [vmem:[%s783_s2] ss:$0 sm:$0xff]  ;;  %v275_v59 = vld [vmem:[#allocation7 + $0x70] sm:$0xff] }
  0x55   :  { %499 = vmatpush3.bf16.msra.mxu1 %v498_v17  ;;  %518 = vmatprep.subr.bf16.mxu0 %v648_v0  ;;  %v534_v53 = vpack.c.bf16 %v274_v52, %v273_v51  ;;  %v276_v60 = vld [vmem:[#allocation7 + $0x78] sm:$0xff] }
  0x56   :  { %500 = vmatprep.subr.bf16.mxu1 %v648_v0  ;;  %v537_v61 = vpack.c.bf16 %v276_v60, %v275_v59  ;;  %v363_v62 = vld [vmem:[%s785_s4] ss:$0 sm:$0xff] }
  0x57   :  { %v364_v3 = vld [vmem:[%s787_s6] ss:$0 sm:$0xff] }
  0x58   :  { %520 = vmatpush3.bf16.msra.mxu0 %v519_v38 }
  0x59   :  { %502 = vmatpush3.bf16.msra.mxu1 %v501_v20  ;;  %521 = vmatprep.subr.bf16.mxu0 %v648_v0 }
  0x5a   :  { %503 = vmatprep.subr.bf16.mxu1 %v648_v0 }
  0x5c   :  { %523 = vmatpush3.bf16.msra.mxu0 %v522_v41 }
  0x5d   :  { %505 = vmatpush3.bf16.msra.mxu1 %v504_v23  ;;  %524 = vmatprep.subr.bf16.mxu0 %v648_v0 }
  0x5e   :  { %506 = vmatprep.subr.bf16.mxu1 %v648_v0 }
  0x60   :  { %526 = vmatpush3.bf16.msra.mxu0 %v525_v44 }
  0x61   :  { %508 = vmatpush3.bf16.msra.mxu1 %v507_v26  ;;  %527 = vmatprep.subr.bf16.mxu0 %v648_v0 }
  0x62   :  { %509 = vmatprep.subr.bf16.mxu1 %v648_v0 }
  0x64   :  { %529 = vmatpush3.bf16.msra.mxu0 %v528_v47 }
  0x65   :  { %511 = vmatpush3.bf16.msra.mxu1 %v510_v29  ;;  %530 = vmatprep.subr.bf16.mxu0 %v648_v0 }
  0x66   :  { %512 = vmatprep.subr.bf16.mxu1 %v648_v0 }
  0x68   :  { %532 = vmatpush3.bf16.msra.mxu0 %v531_v50 }
  0x69   :  { %514 = vmatpush3.bf16.msra.mxu1 %v513_v32  ;;  %533 = vmatprep.subr.bf16.mxu0 %v648_v0 }
  0x6c   :  { %535 = vmatpush3.bf16.msra.mxu0 %v534_v53 }
  0x6d   :  { %536 = vmatprep.subr.bf16.mxu0 %v648_v0 }
  0x70   :  { %538 = vmatpush3.bf16.msra.mxu0 %v537_v61 }
 0x126   :  { %v163_v55 = vpop.f32.mrb[0].mxu0 }
 0x127   :  { %v164_v56 = vadd.f32 %v361_v54, %v163_v55  ;;  %v414_v57 = vpop.f32.mrb[1].mxu0 }
 0x129   :  { %v167_v58 = vmax.f32 %v164_v56, 0.0 }
 0x12b   :  { %448 = vmatmul.mubr.f32.vlgmr.msra.gmra.mrb[0].mxu1 %v167_v58 }
 0x1fe   :  { %v256_v63 = vpop.f32.mrb[0].mxu1 }
 0x1ff   :  { %v257_v1 = vadd.f32 %v363_v62, %v256_v63  ;;  %v449_v0 = vpop.f32.mrb[1].mxu1 }
 0x201   :  { %v260_v2 = vmax.f32 %v257_v1, 0.0 }
 0x203   :  { %483 = vmatmul.mubr.f32.vlgmr.msra.gmra.mrb[2].mxu0 %v260_v2 }
 0x2d6   :  { %v349_v4 = vpop.f32.mrb[2].mxu0 }
 0x2d7   :  { %v350_v5 = vadd.f32 %v364_v3, %v349_v4  ;;  %v484_v6 = vpop.f32.mrb[3].mxu0 }
 0x2d9   :  { %353 = vst [vmem:[%s788_s7] sm:$0xff] %v350_v5 }
 0x2da   :  { %358 = vsyncpa [#allocation3], 1 }
 0x2db   :  { %359 = vsyncpa [#allocation5], 1 }
 0x2dc   :  { %360 = vsyncpa [#allocation8], 1 }

</bundles_post_ra>
